<compile_context>
chip_gen: v7x
topology: tpu7x:2x2x1
jax: 0.10.0
libtpu: 0.0.40
codegen_flags: <defaults>
</compile_context>

<pallas_src>
import functools

import jax
import jax.numpy as jnp
from jax.experimental import pallas as pl
from jax.experimental.pallas import tpu as pltpu

LN_EPS = 1e-5                     # torch.nn.LayerNorm default eps
MXU_DTYPE = jnp.bfloat16          # matmul operand dtype (f32 accumulation)


# ---------------------------------------------------------------------------
# Small helpers
# ---------------------------------------------------------------------------
def _layernorm(x, w, b):
    mu = jnp.mean(x, axis=-1, keepdims=True)
    xc = x - mu
    var = jnp.mean(xc * xc, axis=-1, keepdims=True)
    return xc * jax.lax.rsqrt(var + LN_EPS) * w + b


def _mm(a, b):
    # (M, K) @ (K, N) -> (M, N); bf16 MXU inputs, f32 accumulation.
    return jnp.dot(a.astype(MXU_DTYPE), b.astype(MXU_DTYPE),
                   preferred_element_type=jnp.float32)


def _mm_nt(a, b):
    # (M, K) @ (N, K)^T -> (M, N) without an explicit transpose.
    return jax.lax.dot_general(
        a.astype(MXU_DTYPE), b.astype(MXU_DTYPE),
        (((1,), (1,)), ((), ())), preferred_element_type=jnp.float32)


def _nbytes(a):
    return int(a.size) * a.dtype.itemsize


def _vmem_cap_bytes():
    # Per-generation VMEM budget: ~82% of physical (leaves headroom for Mosaic
    # internal scratch / semaphores).  v5e/v6e: ~105 MiB, v7x: ~52 MiB.
    try:
        cap = int(pltpu.get_tpu_info().vmem_capacity_bytes)
    except Exception:
        cap = 64 << 20            # conservative fallback (v7x physical VMEM)
    return int(cap * 0.82)


_VMEM_CAP = _vmem_cap_bytes()


def _mosaic_params(semantics, est_bytes):
    limit = int(min(max(int(1.5 * est_bytes) + (16 << 20), 32 << 20), _VMEM_CAP))
    return pltpu.CompilerParams(dimension_semantics=semantics,
                                vmem_limit_bytes=limit)


def _wspec(p, ngrid):
    # Constant-index weight/bias spec: fetched once across the grid and
    # single-buffered (double-buffering a never-changing block wastes VMEM).
    idx = (lambda i: (0, 0)) if ngrid == 1 else (lambda i, j: (0, 0))
    try:
        return pl.BlockSpec(p.shape, idx, pipeline_mode=pl.Buffered(1))
    except TypeError:             # older BlockSpec without pipeline_mode kwarg
        return pl.BlockSpec(p.shape, idx)


# ---------------------------------------------------------------------------
# Kernel 1: proj_dec linear, tiled over rows (M)
# ---------------------------------------------------------------------------
def _linear_kernel(x_ref, w_ref, b_ref, o_ref):
    o_ref[...] = (_mm(x_ref[...], w_ref[...]) + b_ref[...]).astype(o_ref.dtype)


def proj_dec_call(x2d, w, b, *, tm=512):
    M, K = x2d.shape
    N = w.shape[1]
    tm = M if M <= tm else tm                    # tm == M or tm % 8 == 0
    b2d = b.reshape(1, -1)
    est = (tm * (K + N) * 4) * 2 + _nbytes(w) + _nbytes(b2d)
    return pl.pallas_call(
        _linear_kernel,
        out_shape=jax.ShapeDtypeStruct((M, N), jnp.float32),
        grid=(pl.cdiv(M, tm),),
        in_specs=[
            pl.BlockSpec((tm, K), lambda i: (i, 0)),
            _wspec(w, 1),
            _wspec(b2d, 1),
        ],
        out_specs=pl.BlockSpec((tm, N), lambda i: (i, 0)),
        compiler_params=_mosaic_params(("parallel",), est),
    )(x2d, w, b2d)


# ---------------------------------------------------------------------------
# Kernel 2: fused transformer Block (pre-LN attention + MLP + both residuals),
# query-tiled over the sequence.  Grid = (B, N/tq); b outer, query tile inner.
# K/V for the whole sequence are computed once per batch element (tile 0) into
# bf16 VMEM scratch, so each query tile only keeps a (tq, N) score block live.
# ---------------------------------------------------------------------------
def _block_kernel(xq_ref, xf_ref,
                  ln1w_ref, ln1b_ref,
                  qw_ref, qb_ref, kw_ref, kb_ref, vw_ref, vb_ref,
                  pw_ref, pb_ref,
                  ln2w_ref, ln2b_ref,
                  f1w_ref, f1b_ref, f2w_ref, f2b_ref,
                  o_ref,
                  k_sc, v_sc,
                  *, heads, scale):
    D = xq_ref.shape[-1]
    hd = D // heads

    # --- K / V for the full sequence, once per batch element (tile 0) -------
    @pl.when(pl.program_id(1) == 0)
    def _():
        xn_f = _layernorm(xf_ref[0], ln1w_ref[0], ln1b_ref[0])
        k_sc[...] = (_mm(xn_f, kw_ref[...]) + kb_ref[0]).astype(k_sc.dtype)
        v_sc[...] = (_mm(xn_f, vw_ref[...]) + vb_ref[0]).astype(v_sc.dtype)

    # --- attention for this query tile --------------------------------------
    xq = xq_ref[0]                                         # (tq, D) f32
    xn_q = _layernorm(xq, ln1w_ref[0], ln1b_ref[0])
    # Fold the 1/sqrt(hd) scale into q instead of the (tq, N) scores.
    q = (_mm(xn_q, qw_ref[...]) + qb_ref[0]) * scale       # (tq, D)

    # TODO(synk): per-head matmuls use an hd-wide (<128) MXU contraction /
    # output dim; head-pairing or a batched-head dot would raise v6e/v7x MXU
    # utilisation further.
    acc = None
    for h in range(heads):
        sl = slice(h * hd, (h + 1) * hd)
        s = _mm_nt(q[:, sl], k_sc[:, sl])                  # (tq, N)
        s = s - jnp.max(s, axis=-1, keepdims=True)
        p = jnp.exp(s)
        p = p * pl.reciprocal(jnp.sum(p, axis=-1, keepdims=True), approx=True)
        oh = _mm(p, v_sc[:, sl])                           # (tq, hd)
        # Fold the output projection per head: no (N, D) attn scratch slab,
        # D-lane-dense accumulator instead of hd=64-wide masked stores.
        contrib = _mm(oh, pw_ref[sl, :])                   # (tq, D)
        acc = contrib if acc is None else acc + contrib
    y = xq + acc + pb_ref[0]                               # residual 1

    # --- MLP (fused: no HBM round-trip between attention and MLP) -----------
    yn = _layernorm(y, ln2w_ref[0], ln2b_ref[0])
    h1 = _mm(yn, f1w_ref[...]) + f1b_ref[0]
    h1 = jax.nn.gelu(h1, approximate=False)                # exact erf GELU (nn.GELU)
    h2 = _mm(h1, f2w_ref[...]) + f2b_ref[0]
    o_ref[0] = (y + h2).astype(o_ref.dtype)                # residual 2


def block_call(x, bp, n_heads, *, tq_max=512):
    B, N, D = x.shape
    d_ff = bp["fc1_w"].shape[1]
    scale = (D // n_heads) ** (-0.5)
    tq = N if N <= tq_max else tq_max                      # tq == N or tq % 8 == 0
    kernel = functools.partial(_block_kernel, heads=n_heads, scale=scale)
    params = [bp["ln1_w"], bp["ln1_b"],
              bp["q_w"], bp["q_b"], bp["k_w"], bp["k_b"], bp["v_w"], bp["v_b"],
              bp["proj_w"], bp["proj_b"],
              bp["ln2_w"], bp["ln2_b"],
              bp["fc1_w"], bp["fc1_b"], bp["fc2_w"], bp["fc2_b"]]
    in_specs = [pl.BlockSpec((1, tq, D), lambda b, r: (b, r, 0)),   # query rows
                pl.BlockSpec((1, N, D), lambda b, r: (b, 0, 0))]    # full seq (K/V)
    in_specs += [_wspec(p, 2) for p in params]
    w_bytes = sum(_nbytes(p) for p in params)
    est = ((N * D * 4) * 2                 # full-seq block (double-buffered)
           + (tq * D * 4) * 4              # query tile + output tile (x2 buf)
           + 2 * N * D * 2                 # K/V bf16 scratch
           + tq * N * 4                    # score block
           + tq * d_ff * 4 + 3 * tq * D * 4  # MLP / attention intermediates
           + w_bytes)                      # single-buffered weights
    return pl.pallas_call(
        kernel,
        out_shape=jax.ShapeDtypeStruct((B, N, D), x.dtype),
        grid=(B, pl.cdiv(N, tq)),
        in_specs=in_specs,
        out_specs=pl.BlockSpec((1, tq, D), lambda b, r: (b, r, 0)),
        scratch_shapes=[pltpu.VMEM((N, D), MXU_DTYPE),
                        pltpu.VMEM((N, D), MXU_DTYPE)],
        # query-tile axis must stay "arbitrary": K/V scratch is written at
        # tile 0 and read by the later tiles of the same batch element.
        compiler_params=_mosaic_params(("parallel", "arbitrary"), est),
    )(x, x, *params)


# ---------------------------------------------------------------------------
# Kernel 3: decoder head.  Masks are produced TRANSPOSED, (n_cls, Np), so the
# lane dim is Np (lane-dense stores) and the final NCHW is just a reshape.
# Both projections run on the full (N, D) LN output and the *results* are
# sliced (no sublane split of xn when Np is not 8-aligned).
# ---------------------------------------------------------------------------
def _head_kernel(x_ref, dnw_ref, dnb_ref, pp_ref, pc_ref, mnw_ref, mnb_ref,
                 o_ref, *, n_cls):
    x = x_ref[0]                                           # (N, D)
    Np = x.shape[0] - n_cls
    xn = _layernorm(x, dnw_ref[0], dnb_ref[0])

    patches = _mm(xn, pp_ref[...])[:Np]                    # (Np, D)
    cls_feat = _mm(xn, pc_ref[...])[Np:]                   # (n_cls, D)

    patches = patches * jax.lax.rsqrt(
        jnp.sum(patches * patches, axis=-1, keepdims=True))
    cls_feat = cls_feat * jax.lax.rsqrt(
        jnp.sum(cls_feat * cls_feat, axis=-1, keepdims=True))

    mt = _mm_nt(cls_feat, patches)                         # (n_cls, Np) == masks^T
    # mask_norm = LayerNorm over n_cls, the leading (sublane) axis here.
    mu = jnp.mean(mt, axis=0, keepdims=True)
    mc = mt - mu
    var = jnp.mean(mc * mc, axis=0, keepdims=True)
    o_ref[0] = (mc * jax.lax.rsqrt(var + LN_EPS) * mnw_ref[...]
                + mnb_ref[...]).astype(o_ref.dtype)


def head_call(x, params, n_cls):
    B, N, D = x.shape
    Np = N - n_cls
    kernel = functools.partial(_head_kernel, n_cls=n_cls)
    plist = [params["decoder_norm_w"], params["decoder_norm_b"],
             params["proj_patch"], params["proj_classes"],
             params["mask_norm_w"], params["mask_norm_b"]]
    in_specs = [pl.BlockSpec((1, N, D), lambda b: (b, 0, 0))]
    in_specs += [_wspec(p, 1) for p in plist]
    est = ((N * D * 4) * 2 + 3 * N * D * 4 + 2 * n_cls * Np * 4
           + sum(_nbytes(p) for p in plist))
    return pl.pallas_call(
        kernel,
        out_shape=jax.ShapeDtypeStruct((B, n_cls, Np), x.dtype),
        grid=(B,),
        in_specs=in_specs,
        out_specs=pl.BlockSpec((1, n_cls, Np), lambda b: (b, 0, 0)),
        compiler_params=_mosaic_params(("parallel",), est),
    )(x, *plist)


# ---------------------------------------------------------------------------
# Parameter init (deterministic; mirrors __init__ / init_weights shapes).
# Matmul weights are stored transposed (in, out) and pre-cast to bf16; the
# qkv Linear is stored split into q/k/v for the fused block kernel.
# ---------------------------------------------------------------------------
def init_params(key, n_cls, d_encoder, n_layers, n_heads, d_model, d_ff):
    keys = iter(jax.random.split(key, 8 + 8 * n_layers))
    f32 = jnp.float32

    def trunc_normal(shape, std=0.02):
        return (std * jax.random.truncated_normal(
            next(keys), -2.0, 2.0, shape)).astype(f32)

    scale = d_model ** (-0.5)
    params = {
        "proj_dec_w": trunc_normal((d_model, d_encoder)).T.astype(MXU_DTYPE),
        "proj_dec_b": jnp.zeros((d_model,), f32),
        "cls_emb": trunc_normal((1, n_cls, d_model)),
        "proj_patch": (scale * jax.random.normal(
            next(keys), (d_model, d_model))).astype(MXU_DTYPE),
        "proj_classes": (scale * jax.random.normal(
            next(keys), (d_model, d_model))).astype(MXU_DTYPE),
        "decoder_norm_w": jnp.ones((1, d_model), f32),
        "decoder_norm_b": jnp.zeros((1, d_model), f32),
        "mask_norm_w": jnp.ones((n_cls, 1), f32),          # stored for masks^T layout
        "mask_norm_b": jnp.zeros((n_cls, 1), f32),
        "blocks": [],
    }
    for _ in range(n_layers):
        blk = {
            "ln1_w": jnp.ones((1, d_model), f32),
            "ln1_b": jnp.zeros((1, d_model), f32),
            "q_w": trunc_normal((d_model, d_model)).T.astype(MXU_DTYPE),
            "q_b": jnp.zeros((1, d_model), f32),
            "k_w": trunc_normal((d_model, d_model)).T.astype(MXU_DTYPE),
            "k_b": jnp.zeros((1, d_model), f32),
            "v_w": trunc_normal((d_model, d_model)).T.astype(MXU_DTYPE),
            "v_b": jnp.zeros((1, d_model), f32),
            "proj_w": trunc_normal((d_model, d_model)).T.astype(MXU_DTYPE),
            "proj_b": jnp.zeros((1, d_model), f32),
            "ln2_w": jnp.ones((1, d_model), f32),
            "ln2_b": jnp.zeros((1, d_model), f32),
            "fc1_w": trunc_normal((d_ff, d_model)).T.astype(MXU_DTYPE),
            "fc1_b": jnp.zeros((1, d_ff), f32),
            "fc2_w": trunc_normal((d_model, d_ff)).T.astype(MXU_DTYPE),
            "fc2_b": jnp.zeros((1, d_model), f32),
        }
        params["blocks"].append(blk)
    return params


# ---------------------------------------------------------------------------
# Full forward (glue in plain JAX, hot paths in Pallas)
# ---------------------------------------------------------------------------
def mask_transformer_forward(x, im_size, params, *, n_cls, patch_size, n_heads):
    H, W = im_size
    GS = H // patch_size
    B, Np, d_encoder = x.shape
    d_model = params["proj_dec_w"].shape[1]

    # proj_dec (row-tiled GEMM)
    x2d = proj_dec_call(x.reshape(B * Np, d_encoder),
                        params["proj_dec_w"], params["proj_dec_b"])
    x = x2d.reshape(B, Np, d_model)

    # concat class embeddings
    cls = jnp.broadcast_to(params["cls_emb"], (B, n_cls, d_model))
    x = jnp.concatenate([x, cls], axis=1)                  # (B, Np + n_cls, d_model)

    # transformer blocks (dropout / drop_path are identity in eval mode)
    for bp in params["blocks"]:
        x = block_call(x, bp, n_heads)

    # decoder head -> masks^T (B, n_cls, Np), lane-dense
    masks = head_call(x, params, n_cls)

    # 'b n (h w) -> b n h w' : pure reshape, no transpose needed
    return masks.reshape(B, n_cls, GS, GS)


# ---------------------------------------------------------------------------
if __name__ == "__main__":
    # Small synthetic config consistent with the module's forward.
    B = 2
    n_cls = 4
    patch_size = 4
    H = W = 16
    d_encoder = 32
    n_layers = 2
    n_heads = 2
    d_model = 32
    d_ff = 64
    GS = H // patch_size
    Np = GS * GS

    key = jax.random.PRNGKey(0)
    pkey, xkey = jax.random.split(key)
    params = init_params(pkey, n_cls, d_encoder, n_layers, n_heads, d_model, d_ff)
    x = jax.random.normal(xkey, (B, Np, d_encoder), dtype=jnp.float32)

    masks = mask_transformer_forward(
        x, (H, W), params, n_cls=n_cls, patch_size=patch_size, n_heads=n_heads
    )
    masks = jax.block_until_ready(masks)
    assert masks.shape == (B, n_cls, GS, GS), masks.shape
    assert bool(jnp.all(jnp.isfinite(masks)))
    print("KERNEL_OK")
</pallas_src>

<mosaic_0001>
module attributes {stable_mosaic.version = 11 : i64} {
  func.func @_linear_kernel(%arg0: i32, %arg1: memref<32x32xf32, #tpu.memory_space<vmem>>, %arg2: memref<32x32xbf16, #tpu.memory_space<vmem>>, %arg3: memref<1x32xf32, #tpu.memory_space<vmem>>, %arg4: memref<32x32xf32, #tpu.memory_space<vmem>>) attributes {dimension_semantics = [#tpu.dimension_semantics<parallel>], iteration_bounds = array<i64: 1>, scalar_prefetch = 0 : i64, scratch_operands = 0 : i64, tpu.core_type = #tpu.core_type<tc>, window_params = [{transform_indices = @transform_0, window_bounds = array<i64: 32, 32>}, {pipeline_mode = #tpu.pipeline_mode<synchronous>, transform_indices = @transform_1, window_bounds = array<i64: 32, 32>}, {pipeline_mode = #tpu.pipeline_mode<synchronous>, transform_indices = @transform_2, window_bounds = array<i64: 1, 32>}, {transform_indices = @transform_3, window_bounds = array<i64: 32, 32>}]} {
    %c0 = arith.constant 0 : index
    %c0_0 = arith.constant 0 : index
    %0 = vector.load %arg1[%c0, %c0_0] : memref<32x32xf32, #tpu.memory_space<vmem>>, vector<32x32xf32>
    %c0_1 = arith.constant 0 : index
    %c0_2 = arith.constant 0 : index
    %1 = vector.load %arg2[%c0_1, %c0_2] : memref<32x32xbf16, #tpu.memory_space<vmem>>, vector<32x32xbf16>
    %2 = arith.truncf %0 : vector<32x32xf32> to vector<32x32xbf16>
    %cst = arith.constant dense<0.000000e+00> : vector<32x32xf32>
    %3 = tpu.matmul %2, %1, %cst {dimension_numbers = #tpu.dot_dimension_numbers<[1], [0], [0], [1], [0, 0, 1, 1], [], []>} : vector<32x32xbf16>, vector<32x32xbf16>, vector<32x32xf32> -> vector<32x32xf32>
    %c0_3 = arith.constant 0 : index
    %c0_4 = arith.constant 0 : index
    %4 = vector.load %arg3[%c0_3, %c0_4] : memref<1x32xf32, #tpu.memory_space<vmem>>, vector<1x32xf32>
    %5 = vector.broadcast %4 : vector<1x32xf32> to vector<32x32xf32>
    %6 = arith.addf %3, %5 : vector<32x32xf32>
    %c0_5 = arith.constant 0 : index
    %c0_6 = arith.constant 0 : index
    %7 = vector.load %arg4[%c0_5, %c0_6] : memref<32x32xf32, #tpu.memory_space<vmem>>, vector<32x32xf32>
    tpu.vector_store %arg4[%c0_5, %c0_6], %6 {strides = array<i32>} : memref<32x32xf32, #tpu.memory_space<vmem>>, vector<32x32xf32>,
    return
  }
  func.func @transform_0(%arg0: i32) -> (i32, i32) {
    %c0_i32 = arith.constant 0 : i32
    %c0_i32_0 = arith.constant 0 : i32
    return %arg0, %c0_i32 : i32, i32
  }
  func.func @transform_1(%arg0: i32) -> (i32, i32) {
    %c0_i32 = arith.constant 0 : i32
    %c0_i32_0 = arith.constant 0 : i32
    %c0_i32_1 = arith.constant 0 : i32
    return %c0_i32, %c0_i32_0 : i32, i32
  }
  func.func @transform_2(%arg0: i32) -> (i32, i32) {
    %c0_i32 = arith.constant 0 : i32
    %c0_i32_0 = arith.constant 0 : i32
    %c0_i32_1 = arith.constant 0 : i32
    return %c0_i32, %c0_i32_0 : i32, i32
  }
  func.func @transform_3(%arg0: i32) -> (i32, i32) {
    %c0_i32 = arith.constant 0 : i32
    %c0_i32_0 = arith.constant 0 : i32
    return %arg0, %c0_i32 : i32, i32
  }
}

</mosaic_0001>

<bundles_post_ra>
// kernel: tpu_custom_call.1
= control target key start
LH: loop header
LB: loop body
LE: loop exit
PB: predicated region body
PF: predicated region fallthrough
CT: control target
= control target key end

     0   :  { %8 = vsyncpa [#allocation3], 0  ;;  %s327_s0 = inlined_call_operand.hbm [shape: f32[32,32], index: 0, kind: input, shape index: {}]   ;;  %s328_s1 = inlined_call_operand.hbm [shape: bf16[32,32], index: 1, kind: input, shape index: {}]   ;;  %s329_s2 = inlined_call_operand.vmem [shape: f32[1,32], index: 2, kind: input, shape index: {}]   ;;  %s330_s3 = inlined_call_operand.hbm [shape: f32[32,32], index: 3, kind: output, shape index: {}]  }
   0x1   :  { %9 = vsyncpa [#allocation6], 0 }
   0x2   :  { %10 = vsyncpa [#allocation4], 0  ;;  %s249_s12 = smov [#allocation2]   ;;  %s177_s16 = scalar_lea.hbm %s327_s0, 512 }
   0x3   :  { %s16_s13 = sshll.u32 %s249_s12, 4  ;;  %p178_p0 = scmp.ne.s32.totalorder %s327_s0, %s177_s16  ;;  %s17_s13 = int_to_ptr.vmem [resolvable:$true] %s16_s13 }
   0x4   :  { %p181_p1 = scmp.lt.u32.totalorder %s177_s16, %s327_s0 }
   0x6   :  { %p183_p2 = pnand %p181_p1, %p178_p0 }
   0x8   :  { %186 = shalt.err (!%p183_p2)
}
   0x9   :  { %s187_s21 = scalar_lea.vmem %s17_s13, 512  ;;  %p192_p4 = scmp.lt.s32.totalorder %s17_s13, %s17_s13 }
   0xa   :  { %p188_p3 = scmp.ne.s32.totalorder %s17_s13, %s187_s21  ;;  %p193_p5 = scmp.lt.s32.totalorder %s187_s21, %s187_s21 }
   0xc   :  { %p194_p6 = por %p193_p5, %p192_p4 }
   0xe   :  { %p195_p7 = pnand %p194_p6, %p188_p3 }
  0x10   :  { %198 = shalt.err (!%p195_p7)
}
  0x11   :  { %s250_s22 = smov 128   ;;  %s251_s23 = smov 8  }
  0x12   :  { %22 = dma.hbm_to_vmem [thread:$0]  %s327_s0, 512, %s17_s13, [#allocation3], %s250_s22, %s250_s22, %s251_s23  }
  0x13   :  { %s252_s26 = smov [#allocation5]   ;;  %s199_s30 = scalar_lea.hbm %s328_s1, 256 }
  0x14   :  { %s28_s27 = sshll.u32 %s252_s26, 4  ;;  %p200_p8 = scmp.ne.s32.totalorder %s328_s1, %s199_s30  ;;  %s29_s27 = int_to_ptr.vmem [resolvable:$true] %s28_s27 }
  0x15   :  { %p203_p9 = scmp.lt.u32.totalorder %s199_s30, %s328_s1 }
  0x17   :  { %p205_p10 = pnand %p203_p9, %p200_p8 }
  0x19   :  { %208 = shalt.err (!%p205_p10)
}
  0x1a   :  { %s209_s8 = scalar_lea.vmem %s29_s27, 256  ;;  %p214_p12 = scmp.lt.s32.totalorder %s29_s27, %s29_s27 }
  0x1b   :  { %p210_p11 = scmp.ne.s32.totalorder %s29_s27, %s209_s8  ;;  %p215_p13 = scmp.lt.s32.totalorder %s209_s8, %s209_s8 }
  0x1d   :  { %p216_p0 = por %p215_p13, %p214_p12 }
  0x1f   :  { %p217_p1 = pnand %p216_p0, %p210_p11 }
  0x21   :  { %220 = shalt.err (!%p217_p1)
}
  0x22   :  { %s253_s0 = smov 64   ;;  %s254_s9 = smov 4  }
  0x23   :  { %34 = dma.hbm_to_vmem [thread:$0]  %s328_s1, 256, %s29_s27, [#allocation6], %s253_s0, %s253_s0, %s254_s9  }
  0x24   :  { %243 = dma.done.wait [#allocation3], 512  }
  0x25   :  { %244 = vsyncadd [#allocation3], 4294966784 }
  0x26   :  { %245 = dma.done.wait [#allocation6], 256  }
  0x27   :  { %246 = vsyncadd [#allocation6], 4294967040  ;;  %v175_v0 = vld [vmem:[#allocation5] sm:$0xff]   ;;  %v176_v1 = vld [vmem:[#allocation5 + $0x8] sm:$0xff]   ;;  %vm73_vm0 = vcmask 261120   ;;  %s255_s13 = smov [#allocation7]  }
  0x28   :  { %160 = vmatprep.subr.bf16.mxu0 %v175_v0  ;;  %v44_v2 = vld [vmem:[#allocation2] sm:$0xff]  ;;  %v45_v3 = vld [vmem:[#allocation2 + $0x8] sm:$0xff]  ;;  %v46_v5 = vld [vmem:[#allocation2 + $0x10] sm:$0xff]  ;;  %s138_s14 = sshll.u32 %s255_s13, 4  ;;  %s139_s14 = int_to_ptr.vmem [resolvable:$true] %s138_s14 }
  0x29   :  { %161 = vmatpush3.bf16.msra.mxu0 %v175_v0  ;;  %v52_v4 = vpack.c.bf16 %v45_v3, %v44_v2  ;;  %v47_v6 = vld [vmem:[#allocation2 + $0x18] sm:$0xff]  ;;  %v151_v8 = vld [vmem:[%s329_s2] ss:$0 sm:$0xff]  ;;  %s221_s2 = scalar_lea.vmem %s139_s14, 512  ;;  %p226_p3 = scmp.lt.s32.totalorder %s139_s14, %s139_s14 }
  0x2a   :  { %162 = vmatprep.subr.bf16.mxu0 %v176_v1  ;;  %v53_v7 = vpack.c.bf16 %v47_v6, %v46_v5  ;;  %p222_p2 = scmp.ne.s32.totalorder %s139_s14, %s221_s2  ;;  %p227_p4 = scmp.lt.s32.totalorder %s221_s2, %s221_s2 }
  0x2b   :  { %164 = vmatprep.mubr.msk.bf16.mxu0 %vm73_vm0, %v52_v4 }
  0x2c   :  { %p228_p5 = por %p227_p4, %p226_p3 }
  0x2d   :  { %163 = vmatpush3.bf16.msra.mxu0 %v176_v1 }
  0x2e   :  { %p229_p6 = pnand %p228_p5, %p222_p2 }
  0x30   :  { %165 = vmatmul.mubr.msk.bf16.vlgmr.msra.gmra.mrb[0].mxu0 %vm73_vm0, %v53_v7 }
 0x103   :  { %v166_v9 = vpop.f32.mrb[0].mxu0 }
 0x104   :  { %v123_v10 = vadd.f32 %v166_v9, %v151_v8  ;;  %v114_v11 = vpop.f32.mrb[1].mxu0 }
 0x105   :  { %v115_v12 = vadd.f32 %v151_v8, %v114_v11  ;;  %v167_v13 = vpop.f32.mrb[2].mxu0 }
 0x106   :  { %131 = vst.msk [vmem:[#allocation7 + $0x10] sm:$0xff] %vm73_vm0, %v123_v10  ;;  %v126_v14 = vadd.f32 %v167_v13, %v151_v8  ;;  %v117_v15 = vpop.f32.mrb[3].mxu0 }
 0x107   :  { %129 = vst.msk [vmem:[#allocation7] sm:$0xff] %vm73_vm0, %v115_v12  ;;  %v118_v16 = vadd.f32 %v151_v8, %v117_v15 }
 0x108   :  { %132 = vst.msk [vmem:[#allocation7 + $0x18] sm:$0xff] %vm73_vm0, %v126_v14 }
 0x109   :  { %130 = vst.msk [vmem:[#allocation7 + $0x8] sm:$0xff] %vm73_vm0, %v118_v16 }
 0x10a   :  { %232 = shalt.err (!%p229_p6)
}
 0x10b   :  { %s233_s17 = scalar_lea.hbm %s330_s3, 512 }
 0x10c   :  { %p234_p7 = scmp.ne.s32.totalorder %s330_s3, %s233_s17  ;;  %p237_p8 = scmp.lt.u32.totalorder %s233_s17, %s330_s3 }
 0x10e   :  { %p239_p9 = pnand %p237_p8, %p234_p7 }
 0x110   :  { %242 = shalt.err (!%p239_p9)
}
 0x111   :  { %144 = dma.vmem_to_hbm [thread:$0]  %s139_s14, 512, %s330_s3, [#allocation4], %s250_s22, %s250_s22, %s251_s23  }
 0x112   :  { %247 = dma.done.wait [#allocation4], 512  }
 0x113   :  { %248 = vsyncadd [#allocation4], 4294966784 }
 0x114   :  { %148 = vsyncpa [#allocation3], 1 }
 0x115   :  { %149 = vsyncpa [#allocation6], 1 }
 0x116   :  { %150 = vsyncpa [#allocation4], 1 }

</bundles_post_ra>
